<compile_context>
chip_gen: v7x
topology: tpu7x:2x2x1
jax: 0.10.0
libtpu: 0.0.40
codegen_flags: <defaults>
</compile_context>

<pallas_src>
import functools

import jax
import jax.numpy as jnp
from jax.experimental import pallas as pl
from jax.experimental.pallas import tpu as pltpu

LN_EPS = 1e-5  # torch.nn.LayerNorm default
_ACTIVATIONS = ("relu", "tanh", "sigmoid", "softplus")


def _layernorm(y, gamma, beta):
    mu = jnp.mean(y, axis=-1, keepdims=True)
    centered = y - mu
    var = jnp.mean(centered * centered, axis=-1, keepdims=True)
    return centered * jax.lax.rsqrt(var + LN_EPS) * gamma + beta


def _apply_activation(v, activation):
    if activation == "relu":
        return jnp.maximum(v, 0.0)
    if activation == "tanh":
        return jnp.tanh(v)
    if activation == "sigmoid":
        return jax.nn.sigmoid(v)
    if activation == "softplus":
        return jax.nn.softplus(v)
    # Mirror the PyTorch module: activation=None crashes in forward(); fail loudly.
    raise ValueError(f"unsupported activation: {activation!r}")


def integrator_kernel(x_ref, hx_ref,
                      w_h2h_ref, g_h2h_ref, b_h2h_ref,
                      w_x2h_ref, g_x2h_ref, b_x2h_ref,
                      out_ref, *, activation):
    n = x_ref.shape[-1]
    x = x_ref[...].astype(jnp.float32)

    # Read hx tile once; reuse for both the MXU operand and the f32 gating residual.
    hx_raw = hx_ref[...]
    hx = hx_raw.astype(jnp.float32)

    # ---- h2h: Linear(N -> 2N, no bias) + LayerNorm(2N), then chunk ----
    # Matmul inputs in the (bf16) weight dtype -> native MXU path, f32 accumulation.
    y = jnp.dot(hx_raw.astype(w_h2h_ref.dtype), w_h2h_ref[...],
                preferred_element_type=jnp.float32)                       # [BM, 2N] f32
    y = _layernorm(y,
                   g_h2h_ref[...].astype(jnp.float32),
                   b_h2h_ref[...].astype(jnp.float32))
    # N % 128 == 0 is asserted in the wrapper, so this chunk is lane-aligned (free).
    h_i = y[:, :n]
    h_g = y[:, n:]

    # ---- x = activation(x + h_i) ----
    xa = _apply_activation(x + h_i, activation)

    # ---- x2h: Linear(N -> N, no bias) + LayerNorm(N) ----
    z = jnp.dot(xa.astype(w_x2h_ref.dtype), w_x2h_ref[...],
                preferred_element_type=jnp.float32)                       # [BM, N] f32
    z = _layernorm(z,
                   g_x2h_ref[...].astype(jnp.float32),
                   b_x2h_ref[...].astype(jnp.float32))

    # ---- gating:  h = (1 - g) * hx + g * x ----
    g = jax.nn.sigmoid(z + h_g)
    out_ref[...] = ((1.0 - g) * hx + g * xa).astype(out_ref.dtype)


def init_integrator_params(key, out_neurons, Tmax, param_dtype=jnp.bfloat16):
    """Deterministic synthetic parameters matching Integrator.__init__ shapes.

    Linear weights are stored pre-transposed as [in, out] and (by default) in bf16;
    LayerNorm affine params follow Integrator._reset_parameters() and stay f32.
    """
    n = out_neurons
    k_wx, k_wh, k_bias = jax.random.split(key, 3)
    w_x2h = (jax.random.normal(k_wx, (n, n), dtype=jnp.float32)
             / jnp.sqrt(n)).astype(param_dtype)
    w_h2h = (jax.random.normal(k_wh, (n, 2 * n), dtype=jnp.float32)
             / jnp.sqrt(n)).astype(param_dtype)
    g_x2h = jnp.full((1, n), 0.1, dtype=jnp.float32)
    b_x2h = -jnp.log(jax.random.uniform(k_bias, (1, n), dtype=jnp.float32,
                                        minval=1.0, maxval=float(Tmax - 1)))
    g_h2h = jnp.full((1, 2 * n), 0.1, dtype=jnp.float32)
    b_h2h = jnp.zeros((1, 2 * n), dtype=jnp.float32)
    return dict(w_x2h=w_x2h, g_x2h=g_x2h, b_x2h=b_x2h,
                w_h2h=w_h2h, g_h2h=g_h2h, b_h2h=b_h2h)


def integrator_forward(x, hx, params, activation="relu", block_m=128):
    """One Integrator step: h = (1-g)*hx + g*act(x + h_i), fused in one Pallas kernel."""
    if activation not in _ACTIVATIONS:
        raise ValueError(f"activation must be one of {_ACTIVATIONS}, got {activation!r}")

    B, N = x.shape
    assert hx.shape == (B, N)
    assert N % 128 == 0, "out_neurons must be a multiple of 128 (TPU lane width)"

    # Batch tile: multiple of 8 sublanes (or the full batch if it is smaller).
    if B <= block_m:
        BM = B
    else:
        assert block_m % 8 == 0, "block_m must be a multiple of 8"
        BM = block_m
    Bp = pl.cdiv(B, BM) * BM
    if Bp != B:
        pad = ((0, Bp - B), (0, 0))
        x = jnp.pad(x, pad)
        hx = jnp.pad(hx, pad)
    grid = (Bp // BM,)

    # VMEM budget: (double-buffered) weights + LN params + double-buffered x/hx/out
    # tiles + margin for f32 intermediates; capped at 64 MiB so it is legal on v7x too.
    nbytes = lambda a: a.size * a.dtype.itemsize
    w_bytes = nbytes(params["w_h2h"]) + nbytes(params["w_x2h"])
    ln_bytes = sum(nbytes(params[k]) for k in ("g_h2h", "b_h2h", "g_x2h", "b_x2h"))
    io_bytes = 2 * 3 * BM * N * x.dtype.itemsize
    vmem_limit = int(min(max(2 * (w_bytes + ln_bytes) + io_bytes + (8 << 20),
                             32 << 20),
                         64 << 20))

    kernel = functools.partial(integrator_kernel, activation=activation)

    def batch_spec():
        return pl.BlockSpec((BM, N), lambda i: (i, 0))

    def const_spec(a):
        # Constant block index -> Pallas keeps the tensor VMEM-resident across steps.
        return pl.BlockSpec(a.shape, lambda i: (0, 0))

    out = pl.pallas_call(
        kernel,
        out_shape=jax.ShapeDtypeStruct((Bp, N), x.dtype),
        grid=grid,
        in_specs=[
            batch_spec(),                 # x
            batch_spec(),                 # hx
            const_spec(params["w_h2h"]),
            const_spec(params["g_h2h"]),
            const_spec(params["b_h2h"]),
            const_spec(params["w_x2h"]),
            const_spec(params["g_x2h"]),
            const_spec(params["b_x2h"]),
        ],
        out_specs=batch_spec(),
        compiler_params=pltpu.CompilerParams(
            dimension_semantics=("parallel",),
            vmem_limit_bytes=vmem_limit),
    )(x, hx,
      params["w_h2h"], params["g_h2h"], params["b_h2h"],
      params["w_x2h"], params["g_x2h"], params["b_x2h"])

    return out[:B] if Bp != B else out


def _reference_forward(x, hx, params, activation="relu"):
    """Pure-JAX reference written independently of the kernel helpers
    (same bf16-matmul / f32-elementwise precision policy as the kernel)."""
    eps = 1e-5
    x32 = x.astype(jnp.float32)
    hx32 = hx.astype(jnp.float32)

    y = jnp.dot(hx.astype(params["w_h2h"].dtype), params["w_h2h"],
                preferred_element_type=jnp.float32)
    mu = y.mean(-1, keepdims=True)
    d = y - mu
    y = (d * jax.lax.rsqrt((d * d).mean(-1, keepdims=True) + eps)
         * params["g_h2h"].astype(jnp.float32) + params["b_h2h"].astype(jnp.float32))
    n = x.shape[-1]
    h_i, h_g = y[:, :n], y[:, n:]

    pre = x32 + h_i
    if activation == "relu":
        xa = jnp.maximum(pre, 0.0)
    elif activation == "tanh":
        xa = jnp.tanh(pre)
    elif activation == "sigmoid":
        xa = jax.nn.sigmoid(pre)
    elif activation == "softplus":
        xa = jax.nn.softplus(pre)
    else:
        raise ValueError(activation)

    z = jnp.dot(xa.astype(params["w_x2h"].dtype), params["w_x2h"],
                preferred_element_type=jnp.float32)
    mu = z.mean(-1, keepdims=True)
    d = z - mu
    z = (d * jax.lax.rsqrt((d * d).mean(-1, keepdims=True) + eps)
         * params["g_x2h"].astype(jnp.float32) + params["b_x2h"].astype(jnp.float32))

    g = jax.nn.sigmoid(z + h_g)
    return ((1.0 - g) * hx32 + g * xa).astype(x.dtype)


if __name__ == "__main__":
    out_neurons = 128   # feature dim (lane-aligned)
    batch = 16
    Tmax = 10
    activation = "relu"

    key = jax.random.PRNGKey(0)
    k_params, k_x, k_h = jax.random.split(key, 3)

    params = init_integrator_params(k_params, out_neurons, Tmax)  # bf16 weights
    x = jax.random.normal(k_x, (batch, out_neurons), dtype=jnp.float32)
    hx = jax.random.normal(k_h, (batch, out_neurons), dtype=jnp.float32)

    # block_m=8 exercises the batch grid (grid=(2,)) even at this small size.
    h = integrator_forward(x, hx, params, activation=activation, block_m=8)
    h = jax.block_until_ready(h)

    h_ref = _reference_forward(x, hx, params, activation=activation)
    assert h.shape == (batch, out_neurons)
    max_err = float(jnp.max(jnp.abs(h - h_ref)))
    assert jnp.allclose(h, h_ref, atol=1e-2, rtol=1e-2), (
        f"mismatch vs JAX reference, max abs err = {max_err}")

    print("KERNEL_OK")
</pallas_src>

<mosaic_0001>
module attributes {stable_mosaic.version = 11 : i64} {
  func.func @integrator_kernel(%arg0: i32, %arg1: memref<8x128xf32, #tpu.memory_space<vmem>>, %arg2: memref<8x128xf32, #tpu.memory_space<vmem>>, %arg3: memref<128x256xbf16, #tpu.memory_space<vmem>>, %arg4: memref<1x256xf32, #tpu.memory_space<vmem>>, %arg5: memref<1x256xf32, #tpu.memory_space<vmem>>, %arg6: memref<128x128xbf16, #tpu.memory_space<vmem>>, %arg7: memref<1x128xf32, #tpu.memory_space<vmem>>, %arg8: memref<1x128xf32, #tpu.memory_space<vmem>>, %arg9: memref<8x128xf32, #tpu.memory_space<vmem>>) attributes {dimension_semantics = [#tpu.dimension_semantics<parallel>], iteration_bounds = array<i64: 2>, scalar_prefetch = 0 : i64, scratch_operands = 0 : i64, tpu.core_type = #tpu.core_type<tc>, window_params = [{transform_indices = @transform_0, window_bounds = array<i64: 8, 128>}, {transform_indices = @transform_1, window_bounds = array<i64: 8, 128>}, {pipeline_mode = #tpu.pipeline_mode<synchronous>, transform_indices = @transform_2, window_bounds = array<i64: 128, 256>}, {pipeline_mode = #tpu.pipeline_mode<synchronous>, transform_indices = @transform_3, window_bounds = array<i64: 1, 256>}, {pipeline_mode = #tpu.pipeline_mode<synchronous>, transform_indices = @transform_4, window_bounds = array<i64: 1, 256>}, {pipeline_mode = #tpu.pipeline_mode<synchronous>, transform_indices = @transform_5, window_bounds = array<i64: 128, 128>}, {pipeline_mode = #tpu.pipeline_mode<synchronous>, transform_indices = @transform_6, window_bounds = array<i64: 1, 128>}, {pipeline_mode = #tpu.pipeline_mode<synchronous>, transform_indices = @transform_7, window_bounds = array<i64: 1, 128>}, {transform_indices = @transform_8, window_bounds = array<i64: 8, 128>}]} {
    %c0 = arith.constant 0 : index
    %c0_0 = arith.constant 0 : index
    %0 = vector.load %arg1[%c0, %c0_0] : memref<8x128xf32, #tpu.memory_space<vmem>>, vector<8x128xf32>
    %c0_1 = arith.constant 0 : index
    %c0_2 = arith.constant 0 : index
    %1 = vector.load %arg2[%c0_1, %c0_2] : memref<8x128xf32, #tpu.memory_space<vmem>>, vector<8x128xf32>
    %2 = arith.truncf %1 : vector<8x128xf32> to vector<8x128xbf16>
    %c0_3 = arith.constant 0 : index
    %c0_4 = arith.constant 0 : index
    %3 = vector.load %arg3[%c0_3, %c0_4] : memref<128x256xbf16, #tpu.memory_space<vmem>>, vector<128x256xbf16>
    %cst = arith.constant dense<0.000000e+00> : vector<8x256xf32>
    %4 = tpu.matmul %2, %3, %cst {dimension_numbers = #tpu.dot_dimension_numbers<[1], [0], [0], [1], [0, 0, 1, 1], [], []>} : vector<8x128xbf16>, vector<128x256xbf16>, vector<8x256xf32> -> vector<8x256xf32>
    %c0_5 = arith.constant 0 : index
    %c0_6 = arith.constant 0 : index
    %5 = vector.load %arg4[%c0_5, %c0_6] : memref<1x256xf32, #tpu.memory_space<vmem>>, vector<1x256xf32>
    %c0_7 = arith.constant 0 : index
    %c0_8 = arith.constant 0 : index
    %6 = vector.load %arg5[%c0_7, %c0_8] : memref<1x256xf32, #tpu.memory_space<vmem>>, vector<1x256xf32>
    %cst_9 = arith.constant dense<0.000000e+00> : vector<8xf32>
    %7 = vector.multi_reduction <add>, %4, %cst_9 [1] : vector<8x256xf32> to vector<8xf32>
    %8 = vector.shape_cast %7 : vector<8xf32> to vector<8x1xf32>
    %cst_10 = arith.constant 2.560000e+02 : f32
    %9 = vector.broadcast %cst_10 : f32 to vector<8x1xf32>
    %10 = arith.divf %8, %9 : vector<8x1xf32>
    %11 = vector.broadcast %10 : vector<8x1xf32> to vector<8x256xf32>
    %12 = arith.subf %4, %11 : vector<8x256xf32>
    %13 = arith.mulf %12, %12 : vector<8x256xf32>
    %cst_11 = arith.constant dense<0.000000e+00> : vector<8xf32>
    %14 = vector.multi_reduction <add>, %13, %cst_11 [1] : vector<8x256xf32> to vector<8xf32>
    %15 = vector.shape_cast %14 : vector<8xf32> to vector<8x1xf32>
    %cst_12 = arith.constant 2.560000e+02 : f32
    %16 = vector.broadcast %cst_12 : f32 to vector<8x1xf32>
    %17 = arith.divf %15, %16 : vector<8x1xf32>
    %cst_13 = arith.constant 9.99999974E-6 : f32
    %18 = vector.broadcast %cst_13 : f32 to vector<8x1xf32>
    %19 = arith.addf %17, %18 : vector<8x1xf32>
    %20 = math.rsqrt %19 : vector<8x1xf32>
    %21 = vector.broadcast %20 : vector<8x1xf32> to vector<8x256xf32>
    %22 = arith.mulf %12, %21 : vector<8x256xf32>
    %23 = vector.broadcast %5 : vector<1x256xf32> to vector<8x256xf32>
    %24 = arith.mulf %22, %23 : vector<8x256xf32>
    %25 = vector.broadcast %6 : vector<1x256xf32> to vector<8x256xf32>
    %26 = arith.addf %24, %25 : vector<8x256xf32>
    %27 = vector.extract_strided_slice %26 {offsets = [0, 0], sizes = [8, 128], strides = [1, 1]} : vector<8x256xf32> to vector<8x128xf32>
    %28 = vector.extract_strided_slice %26 {offsets = [0, 128], sizes = [8, 128], strides = [1, 1]} : vector<8x256xf32> to vector<8x128xf32>
    %29 = arith.addf %0, %27 : vector<8x128xf32>
    %cst_14 = arith.constant 0.000000e+00 : f32
    %30 = vector.broadcast %cst_14 : f32 to vector<8x128xf32>
    %31 = arith.maximumf %29, %30 : vector<8x128xf32>
    %32 = arith.truncf %31 : vector<8x128xf32> to vector<8x128xbf16>
    %c0_15 = arith.constant 0 : index
    %c0_16 = arith.constant 0 : index
    %33 = vector.load %arg6[%c0_15, %c0_16] : memref<128x128xbf16, #tpu.memory_space<vmem>>, vector<128x128xbf16>
    %cst_17 = arith.constant dense<0.000000e+00> : vector<8x128xf32>
    %34 = tpu.matmul %32, %33, %cst_17 {dimension_numbers = #tpu.dot_dimension_numbers<[1], [0], [0], [1], [0, 0, 1, 1], [], []>} : vector<8x128xbf16>, vector<128x128xbf16>, vector<8x128xf32> -> vector<8x128xf32>
    %c0_18 = arith.constant 0 : index
    %c0_19 = arith.constant 0 : index
    %35 = vector.load %arg7[%c0_18, %c0_19] : memref<1x128xf32, #tpu.memory_space<vmem>>, vector<1x128xf32>
    %c0_20 = arith.constant 0 : index
    %c0_21 = arith.constant 0 : index
    %36 = vector.load %arg8[%c0_20, %c0_21] : memref<1x128xf32, #tpu.memory_space<vmem>>, vector<1x128xf32>
    %cst_22 = arith.constant dense<0.000000e+00> : vector<8xf32>
    %37 = vector.multi_reduction <add>, %34, %cst_22 [1] : vector<8x128xf32> to vector<8xf32>
    %38 = vector.shape_cast %37 : vector<8xf32> to vector<8x1xf32>
    %cst_23 = arith.constant 1.280000e+02 : f32
    %39 = vector.broadcast %cst_23 : f32 to vector<8x1xf32>
    %40 = arith.divf %38, %39 : vector<8x1xf32>
    %41 = vector.broadcast %40 : vector<8x1xf32> to vector<8x128xf32>
    %42 = arith.subf %34, %41 : vector<8x128xf32>
    %43 = arith.mulf %42, %42 : vector<8x128xf32>
    %cst_24 = arith.constant dense<0.000000e+00> : vector<8xf32>
    %44 = vector.multi_reduction <add>, %43, %cst_24 [1] : vector<8x128xf32> to vector<8xf32>
    %45 = vector.shape_cast %44 : vector<8xf32> to vector<8x1xf32>
    %cst_25 = arith.constant 1.280000e+02 : f32
    %46 = vector.broadcast %cst_25 : f32 to vector<8x1xf32>
    %47 = arith.divf %45, %46 : vector<8x1xf32>
    %cst_26 = arith.constant 9.99999974E-6 : f32
    %48 = vector.broadcast %cst_26 : f32 to vector<8x1xf32>
    %49 = arith.addf %47, %48 : vector<8x1xf32>
    %50 = math.rsqrt %49 : vector<8x1xf32>
    %51 = vector.broadcast %50 : vector<8x1xf32> to vector<8x128xf32>
    %52 = arith.mulf %42, %51 : vector<8x128xf32>
    %53 = vector.broadcast %35 : vector<1x128xf32> to vector<8x128xf32>
    %54 = arith.mulf %52, %53 : vector<8x128xf32>
    %55 = vector.broadcast %36 : vector<1x128xf32> to vector<8x128xf32>
    %56 = arith.addf %54, %55 : vector<8x128xf32>
    %57 = arith.addf %56, %28 : vector<8x128xf32>
    %58 = arith.negf %57 : vector<8x128xf32>
    %59 = math.exp %58 : vector<8x128xf32>
    %cst_27 = arith.constant 1.000000e+00 : f32
    %60 = vector.broadcast %cst_27 : f32 to vector<8x128xf32>
    %61 = arith.addf %60, %59 : vector<8x128xf32>
    %62 = arith.divf %60, %61 : vector<8x128xf32>
    %cst_28 = arith.constant 1.000000e+00 : f32
    %63 = vector.broadcast %cst_28 : f32 to vector<8x128xf32>
    %64 = arith.subf %63, %62 : vector<8x128xf32>
    %65 = arith.mulf %64, %1 : vector<8x128xf32>
    %66 = arith.mulf %62, %31 : vector<8x128xf32>
    %67 = arith.addf %65, %66 : vector<8x128xf32>
    %c0_29 = arith.constant 0 : index
    %c0_30 = arith.constant 0 : index
    %68 = vector.load %arg9[%c0_29, %c0_30] : memref<8x128xf32, #tpu.memory_space<vmem>>, vector<8x128xf32>
    tpu.vector_store %arg9[%c0_29, %c0_30], %67 {strides = array<i32>} : memref<8x128xf32, #tpu.memory_space<vmem>>, vector<8x128xf32>,
    return
  }
  func.func @transform_0(%arg0: i32) -> (i32, i32) {
    %c0_i32 = arith.constant 0 : i32
    %c0_i32_0 = arith.constant 0 : i32
    return %arg0, %c0_i32 : i32, i32
  }
  func.func @transform_1(%arg0: i32) -> (i32, i32) {
    %c0_i32 = arith.constant 0 : i32
    %c0_i32_0 = arith.constant 0 : i32
    return %arg0, %c0_i32 : i32, i32
  }
  func.func @transform_2(%arg0: i32) -> (i32, i32) {
    %c0_i32 = arith.constant 0 : i32
    %c0_i32_0 = arith.constant 0 : i32
    %c0_i32_1 = arith.constant 0 : i32
    return %c0_i32, %c0_i32_0 : i32, i32
  }
  func.func @transform_3(%arg0: i32) -> (i32, i32) {
    %c0_i32 = arith.constant 0 : i32
    %c0_i32_0 = arith.constant 0 : i32
    %c0_i32_1 = arith.constant 0 : i32
    return %c0_i32, %c0_i32_0 : i32, i32
  }
  func.func @transform_4(%arg0: i32) -> (i32, i32) {
    %c0_i32 = arith.constant 0 : i32
    %c0_i32_0 = arith.constant 0 : i32
    %c0_i32_1 = arith.constant 0 : i32
    return %c0_i32, %c0_i32_0 : i32, i32
  }
  func.func @transform_5(%arg0: i32) -> (i32, i32) {
    %c0_i32 = arith.constant 0 : i32
    %c0_i32_0 = arith.constant 0 : i32
    %c0_i32_1 = arith.constant 0 : i32
    return %c0_i32, %c0_i32_0 : i32, i32
  }
  func.func @transform_6(%arg0: i32) -> (i32, i32) {
    %c0_i32 = arith.constant 0 : i32
    %c0_i32_0 = arith.constant 0 : i32
    %c0_i32_1 = arith.constant 0 : i32
    return %c0_i32, %c0_i32_0 : i32, i32
  }
  func.func @transform_7(%arg0: i32) -> (i32, i32) {
    %c0_i32 = arith.constant 0 : i32
    %c0_i32_0 = arith.constant 0 : i32
    %c0_i32_1 = arith.constant 0 : i32
    return %c0_i32, %c0_i32_0 : i32, i32
  }
  func.func @transform_8(%arg0: i32) -> (i32, i32) {
    %c0_i32 = arith.constant 0 : i32
    %c0_i32_0 = arith.constant 0 : i32
    return %arg0, %c0_i32 : i32, i32
  }
}

</mosaic_0001>

<bundles_post_ra>
// kernel: tpu_custom_call.1
= control target key start
LH: loop header
LB: loop body
LE: loop exit
PB: predicated region body
PF: predicated region fallthrough
CT: control target
= control target key end

     0   :  { %s1588_s0 = inlined_call_operand.hbm [shape: f32[16,128], index: 0, kind: input, shape index: {}]   ;;  %s1589_s1 = inlined_call_operand.hbm [shape: f32[16,128], index: 1, kind: input, shape index: {}]   ;;  %s1590_s2 = inlined_call_operand.hbm [shape: bf16[128,256], index: 2, kind: input, shape index: {}]   ;;  %s1591_s3 = inlined_call_operand.vmem [shape: f32[1,256], index: 3, kind: input, shape index: {}]   ;;  %s1592_s4 = inlined_call_operand.vmem [shape: f32[1,256], index: 4, kind: input, shape index: {}]   ;;  %s1593_s5 = inlined_call_operand.hbm [shape: bf16[128,128], index: 5, kind: input, shape index: {}]   ;;  %s1594_s6 = inlined_call_operand.vmem [shape: f32[1,128], index: 6, kind: input, shape index: {}]   ;;  %s1595_s7 = inlined_call_operand.vmem [shape: f32[1,128], index: 7, kind: input, shape index: {}]   ;;  %s1596_s8 = inlined_call_operand.hbm [shape: f32[16,128], index: 8, kind: output, shape index: {}]  }
   0x1   :  { %1604 = sst [smem:[#allocation19_spill]] %s1590_s2 }
   0x2   :  { %1605 = sst [smem:[#allocation20_spill]] %s1593_s5 }
   0x3   :  { %13 = vsyncpa [#allocation3], 0 }
   0x4   :  { %15 = vsyncpa [#allocation3 + $0x1], 0 }
   0x5   :  { %16 = vsyncpa [#allocation6], 0 }
   0x6   :  { %18 = vsyncpa [#allocation6 + $0x1], 0 }
   0x7   :  { %19 = vsyncpa [#allocation9], 0 }
   0x8   :  { %20 = vsyncpa [#allocation4], 0 }
   0x9   :  { %22 = vsyncpa [#allocation4 + $0x1], 0  ;;  %s1293_s27 = smov 0   ;;  %s1295_s28 = smov 0  }
   0xa   :  { %s1297_s29 = smov 0   ;;  %s1299_s30 = smov 0  }
   0xb LB: > { %1606 = sst [smem:[#allocation16_spill]] %s1230_s29  ;;  %s1314_s9 = sadd.s32 4294967295, %s1234_s30   ;;  %s1234_s30 = sphi %s1299_s30, %s1627_s30   ;;  %s1230_s29 = sphi %s1297_s29, %s1629_s29   ;;  %s1226_s28 = sphi %s1295_s28, %s1631_s28   ;;  %s1222_s27 = sphi %s1293_s27, %s1630_s27  }
   0xc   : > { %s846_s10 = sadd.s32 4294967294, %s1234_s30   ;;  %p48_p0 = scmp.ne.s32.totalorder %s1226_s28, %s1222_s27 }
   0xd   : > { %p1597_p1 = scmp.eq.s32.totalorder %s1314_s9, 0  ;;  %p230_p3 = scmp.eq.s32.totalorder %s846_s10, 1 }
   0xe   : > { %p847_p5 = scmp.ge.s32.totalorder %s1234_s30, 1  ;;  %p237_p7 = scmp.lt.s32.totalorder %s1234_s30, 3 }
   0xf   : > { %p1323_p4 = por %p1597_p1, %p48_p0  ;;  %p1328_p6 = por %p230_p3, %p48_p0 }
  0x10   : > { %p1333_p8 = pnand %p847_p5, %p237_p7  ;;  %s1236_s14 = smov [#allocation7]  }
  0x11   : > { %s1607_s11 = scalar_select %p1323_p4, 1, 0 }
  0x12   : > { %s1608_s12 = scalar_select %p1328_p6, 1, 0 }
  0x13   : > { %s1609_s13 = scalar_select %p1333_p8, 1, 0 }
  0x14   : > { %s249_s15 = sshll.u32 %s1236_s14, 4  ;;  %p935_p9 = pneg %p1333_p8  ;;  %s1337_s15 = int_to_ptr.vmem [resolvable:$true] %s249_s15 }
  0x15   : > { %s1237_s17 = smov [#allocation8]   ;;  %s1611_s2 = sld [smem:[#allocation19_spill]] }
  0x16   : > { %p1344_p11 = pnand %p935_p9, %p1597_p1  ;;  %s268_s18 = sshll.u32 %s1237_s17, 4  ;;  %s1348_s18 = int_to_ptr.vmem [resolvable:$true] %s268_s18 }
  0x18   : > { %p1042_p13 = pneg %p1344_p11 }
  0x1b   : > { %s1040_s21 = scalar_lea.hbm %s1611_s2, 2048 }
  0x1c   : > { %p1041_p12 = scmp.ne.s32.totalorder %s1611_s2, %s1040_s21  ;;  %p1047_p5 = scmp.lt.u32.totalorder %s1040_s21, %s1611_s2 }
  0x1e   : > { %p1043_p0 = pnand %p1042_p13, %p1041_p12 }
  0x20   : > { %p1044_p3 = pneg %p1043_p0 }
  0x22   : > { %p1049_p7 = pnand %p1047_p5, %p1044_p3 }
  0x24   : > { %1052 = shalt.err (!%p1049_p7)
}
  0x25   : > { %s1053_s26 = scalar_lea.vmem %s1337_s15, 2048  ;;  %p1061_p2 = scmp.lt.s32.totalorder %s1337_s15, %s1337_s15 }
  0x26   : > { %p1054_p9 = scmp.ne.s32.totalorder %s1337_s15, %s1053_s26  ;;  %p1062_p12 = scmp.lt.s32.totalorder %s1053_s26, %s1053_s26 }
  0x28   : > { %p1056_p10 = pnand %p1054_p9, %p1042_p13  ;;  %p1063_p0 = por %p1062_p12, %p1061_p2 }
  0x2a   : > { %p1057_p1 = pneg %p1056_p10 }
  0x2c   : > { %p1064_p6 = pnand %p1063_p0, %p1057_p1 }
  0x2e   : > { %1067 = shalt.err (!%p1064_p6)
}
  0x2f   : > { %s1238_s10 = smov 128   ;;  %s1239_s14 = smov 8  }
  0x30   : > { %938 = dma.hbm_to_vmem [thread:$0]  (!%p1344_p11), %s1611_s2, 2048, %s1337_s15, [#allocation6], %s1238_s10, %s1238_s10, %s1239_s14  }
  0x31   : > { %s1612_s5 = sld [smem:[#allocation20_spill]] }
  0x37   : > { %s1068_s22 = scalar_lea.hbm %s1612_s5, 1024 }
  0x38   : > { %p1069_p2 = scmp.ne.s32.totalorder %s1612_s5, %s1068_s22  ;;  %p1075_p10 = scmp.lt.u32.totalorder %s1068_s22, %s1612_s5 }
  0x3a   : > { %p1071_p1 = pnand %p1069_p2, %p1042_p13 }
  0x3c   : > { %p1072_p6 = pneg %p1071_p1 }
  0x3e   : > { %p1077_p3 = pnand %p1075_p10, %p1072_p6 }
  0x40   : > { %1080 = shalt.err (!%p1077_p3)
}
  0x41   : > { %s1081_s15 = scalar_lea.vmem %s1348_s18, 1024  ;;  %p1089_p12 = scmp.lt.s32.totalorder %s1348_s18, %s1348_s18 }
  0x42   : > { %p1082_p5 = scmp.ne.s32.totalorder %s1348_s18, %s1081_s15  ;;  %p1090_p0 = scmp.lt.s32.totalorder %s1081_s15, %s1081_s15 }
  0x44   : > { %p1084_p7 = pnand %p1082_p5, %p1042_p13  ;;  %p1091_p2 = por %p1090_p0, %p1089_p12 }
  0x46   : > { %p1085_p9 = pneg %p1084_p7 }
  0x48   : > { %p1092_p1 = pnand %p1091_p2, %p1085_p9 }
  0x4a   : > { %1095 = shalt.err (!%p1092_p1)
}
  0x4b   : > { %s1240_s10 = smov 64   ;;  %s1241_s14 = smov 4  }
  0x4c   : > { %941 = dma.hbm_to_vmem [thread:$0]  (!%p1344_p11), %s1612_s5, 1024, %s1348_s18, [#allocation9], %s1240_s10, %s1240_s10, %s1241_s14  }
  0x4d   : > { %s1403_s20 = sadd.s32 1, %s1234_s30   ;;  %s35_s22 = sadd.s32 1, %s1230_s29 }
  0x4e   : > { %1613 = sst [smem:[#allocation17_spill]] %s1403_s20  ;;  %s32_s21 = ssub.s32 %s1234_s30, %s1403_s20 }
  0x4f   : > { %p33_p13 = scmp.eq.s32.totalorder %s32_s21, 0  ;;  %p42_p6 = scmp.ne.s32.totalorder %s1230_s29, %s1226_s28 }
  0x50   : > { %p43_p10 = scmp.eq.s32.totalorder %s1234_s30, 0  ;;  %p1615_p5 = scmp.eq.s32.totalorder %s1314_s9, 1 }
  0x51   : > { %s1412_s23 = scalar_select %p33_p13, %s1230_s29, %s35_s22  }
  0x52   : > { %p44_p3 = por %p43_p10, %p42_p6  ;;  %p1416_p7 = por %p1615_p5, %p42_p6 }
  0x53   : > { %1614 = sst [smem:[#allocation18_spill]] %s1412_s23  ;;  %p955_p9 = scmp.lt.s32.totalorder %s1234_s30, 2 }
  0x54   : > { %s1616_s24 = scalar_select %p1416_p7, 1, 0 }
  0x55   : > { %s288_s16 = sand.u32 1, %s1230_s29   ;;  %s852_s25 = sshll.u32 %s1234_s30, 7 }
  0x56   : > { %s1422_s18 = sshll.u32 %s288_s16, 3  ;;  %s1428_s10 = scalar_lea.hbm %s1588_s0, %s852_s25 }
  0x57   : > { %s292_s14 = scalar_lea.vmem [#allocation2], %s1422_s18  ;;  %p1433_p11 = pnand %p955_p9, %p44_p3 }
  0x58   : > { %s299_s17 = sshll.u32 %s292_s14, 4  ;;  %s1440_s26 = scalar_lea.hbm %s1589_s1, %s852_s25  ;;  %s1431_s17 = int_to_ptr.vmem [resolvable:$true] %s299_s17 }
  0x59   : > { %s306_s15 = sand.u32 1, %s1234_s30   ;;  %s289_s2 = scalar_lea.sflag [#allocation3], %s288_s16 }
  0x5a   : > { %s1096_s5 = scalar_lea.hbm %s1428_s10, 128  ;;  %p1098_p0 = pneg %p1433_p11 }
  0x5b   : > { %p1097_p12 = scmp.ne.s32.totalorder %s1428_s10, %s1096_s5  ;;  %s1101_s29 = scalar_lea.hbm %s1588_s0, 256 }
  0x5c   : > { %p1102_p13 = scmp.lt.u32.totalorder %s1428_s10, %s1588_s0  ;;  %p1103_p6 = scmp.lt.u32.totalorder %s1101_s29, %s1096_s5 }
  0x5d   : > { %p1099_p2 = pnand %p1098_p0, %p1097_p12  ;;  %p1105_p3 = scmp.lt.u32.totalorder %s1096_s5, %s1428_s10 }
  0x5e   : > { %p1104_p10 = por %p1103_p6, %p1102_p13 }
  0x5f   : > { %p1100_p1 = pneg %p1099_p2 }
  0x60   : > { %p1106_p5 = por %p1105_p3, %p1104_p10 }
  0x62   : > { %p1107_p9 = pnand %p1106_p5, %p1100_p1 }
  0x64   : > { %1110 = shalt.err (!%p1107_p9)
}
  0x65   : > { %s1111_s16 = scalar_lea.vmem %s1431_s17, 128  ;;  %s1242_s23 = smov [#allocation2]  }
  0x66   : > { %p1112_p12 = scmp.ne.s32.totalorder %s1431_s17, %s1111_s16  ;;  %s1116_s25 = sshll.u32 %s1242_s23, 4  ;;  %s1117_s25 = int_to_ptr.vmem [resolvable:$false] %s1116_s25 }
  0x67   : > { %s1118_s20 = scalar_lea.vmem %s1117_s25, 256  ;;  %p1119_p4 = scmp.lt.s32.totalorder %s1431_s17, %s1117_s25 }
  0x68   : > { %p1114_p2 = pnand %p1112_p12, %p1098_p0  ;;  %p1120_p13 = scmp.lt.s32.totalorder %s1118_s20, %s1111_s16 }
  0x6a   : > { %p1115_p7 = pneg %p1114_p2  ;;  %p1121_p6 = por %p1120_p13, %p1119_p4 }
  0x6c   : > { %p1122_p10 = pnand %p1121_p6, %p1115_p7 }
  0x6e   : > { %1125 = shalt.err (!%p1122_p10)
}
  0x6f   : > { %945 = dma.hbm_to_vmem [thread:$0]  (!%p1433_p11), %s1428_s10, 128, %s1431_s17, %s289_s2  }
  0x70   : > { %s310_s5 = scalar_lea.vmem [#allocation5], %s1422_s18  ;;  %s307_s22 = scalar_lea.sflag [#allocation6], %s306_s15 }
  0x71   : > { %s317_s29 = sshll.u32 %s310_s5, 4  ;;  %s1126_s14 = scalar_lea.hbm %s1440_s26, 128  ;;  %s318_s29 = int_to_ptr.vmem [resolvable:$true] %s317_s29 }
  0x72   : > { %p1127_p4 = scmp.ne.s32.totalorder %s1440_s26, %s1126_s14  ;;  %s1131_s23 = scalar_lea.hbm %s1589_s1, 256 }
  0x73   : > { %p1132_p3 = scmp.lt.u32.totalorder %s1440_s26, %s1589_s1  ;;  %p1133_p5 = scmp.lt.u32.totalorder %s1131_s23, %s1126_s14 }
  0x74   : > { %p1129_p7 = pnand %p1127_p4, %p1098_p0  ;;  %p1135_p12 = scmp.lt.u32.totalorder %s1126_s14, %s1440_s26 }
  0x75   : > { %p1134_p9 = por %p1133_p5, %p1132_p3 }
  0x76   : > { %p1130_p1 = pneg %p1129_p7 }
  0x77   : > { %p1136_p2 = por %p1135_p12, %p1134_p9 }
  0x79   : > { %p1137_p13 = pnand %p1136_p2, %p1130_p1 }
  0x7b   : > { %1140 = shalt.err (!%p1137_p13)
}
  0x7c   : > { %s1141_s2 = scalar_lea.vmem %s318_s29, 128  ;;  %s1243_s18 = smov [#allocation5]  }
  0x7d   : > { %p1142_p6 = scmp.ne.s32.totalorder %s318_s29, %s1141_s2  ;;  %s1146_s10 = sshll.u32 %s1243_s18, 4  ;;  %s1147_s10 = int_to_ptr.vmem [resolvable:$false] %s1146_s10 }
  0x7e   : > { %s1148_s17 = scalar_lea.vmem %s1147_s10, 256  ;;  %p1149_p7 = scmp.lt.s32.totalorder %s318_s29, %s1147_s10 }
  0x7f   : > { %p1144_p10 = pnand %p1142_p6, %p1098_p0  ;;  %p1150_p8 = scmp.lt.s32.totalorder %s1148_s17, %s1141_s2 }
  0x81   : > { %p1145_p4 = pneg %p1144_p10  ;;  %p1151_p3 = por %p1150_p8, %p1149_p7 }
  0x83   : > { %p1152_p5 = pnand %p1151_p3, %p1145_p4 }
  0x85   : > { %1155 = shalt.err (!%p1152_p5)
}
  0x86   : > { %948 = dma.hbm_to_vmem [thread:$0]  (!%p1433_p11), %s1440_s26, 128, %s318_s29, %s307_s22  }
  0x87   : > { %p1618_p1 = scmp.ne.s32.totalorder %s1609_s13, 0 }
  0x88   : > { %s1493_s15 = sand.u32 (!%p1618_p1), 1, %s1226_s28   ;;  %p1619_p8 = scmp.ne.s32.totalorder (!%p1618_p1), %s1607_s11, 0 }
  0x89   : > { %326 = sbr.rel (%p1618_p1) target bundleno = 1293 (0x50d), region = 52  ;;  %s1496_s5 = sshll.u32 (!%p1618_p1), %s1493_s15, 3 }
  0x8a   : > { %s329_s14 = scalar_lea.sflag (!%p1618_p1), [#allocation3], %s1493_s15  ;;  %s332_s21 = scalar_lea.vmem (!%p1618_p1), [#allocation2], %s1496_s5 }
  0x90   : > { %1201 = dma.done.wait (%p1619_p8), %s329_s14, 128  }
  0x91   : > { %1203 = vsyncadd (%p1619_p8), %s329_s14, 4294967168  ;;  %s337_s13 = sand.u32 1, %s1314_s9   ;;  %s341_s26 = scalar_lea.vmem [#allocation5], %s1496_s5 }
  0x92   : > { %s338_s19 = scalar_lea.sflag [#allocation6], %s337_s13 }
  0x93   : > { %1205 = dma.done.wait (%p1619_p8), %s338_s19, 128  }
  0x94   : > { %1207 = vsyncadd (%p1619_p8), %s338_s19, 4294967168  ;;  %p1620_p11 = scmp.eq.s32.totalorder %s1314_s9, 0 }
  0x96   : > { %1209 = dma.done.wait (%p1620_p11), [#allocation6], 2048   ;;  %p1621_p0 = pmov %p1620_p11 }
  0x98   : > { %1211 = vsyncadd (%p1621_p0), [#allocation6], 4294965248  ;;  %p1622_p9 = pmov %p1621_p0 }
  0x99   : > { %p1623_p12 = pmov %p1621_p0 }
  0x9a   : > { %1213 = dma.done.wait (%p1622_p9), [#allocation9], 1024  }
  0x9b   : > { %1215 = vsyncadd (%p1623_p12), [#allocation9], 4294966272  ;;  %v1244_v0 = vmov 0   ;;  %v1000_v1 = vld [vmem:[#allocation7 + $0x4] ss:$8 sps:$4 sm:$0xff]   ;;  %v1520_v17 = vld [vmem:[%s341_s26] sm:$0xff]  ;;  %v548_v36 = vlaneseq }
  0x9c   : > { %519 = vmatprep.mubr.bf16.mxu0 %v1244_v0  ;;  %v1002_v2 = vld [vmem:[#allocation7] ss:$8 sps:$4 sm:$0xff]   ;;  %487 = vmatprep.subr.bf16.mxu0 %v1000_v1  ;;  %v1003_v3 = vld [vmem:[#allocation7 + $0x14] ss:$8 sps:$4 sm:$0xff]   ;;  %v1005_v4 = vld [vmem:[#allocation7 + $0x10] ss:$8 sps:$4 sm:$0xff]   ;;  %v390_v18 = vpack.c.bf16 %v1520_v17, %v1520_v17 }
  0x9d   : > { %488 = vmatpush1.bf16.msra.mxu0 %v1002_v2  ;;  %v1006_v5 = vld [vmem:[#allocation7 + $0x24] ss:$8 sps:$4 sm:$0xff]   ;;  %v1008_v6 = vld [vmem:[#allocation7 + $0x20] ss:$8 sps:$4 sm:$0xff]   ;;  %v1009_v7 = vld [vmem:[#allocation7 + $0x34] ss:$8 sps:$4 sm:$0xff]  }
  0x9e   : > { %489 = vmatprep.subr.bf16.mxu0 %v1003_v3  ;;  %v1011_v8 = vld [vmem:[#allocation7 + $0x30] ss:$8 sps:$4 sm:$0xff]   ;;  %v1012_v9 = vld [vmem:[#allocation7 + $0x44] ss:$8 sps:$4 sm:$0xff]   ;;  %v1014_v10 = vld [vmem:[#allocation7 + $0x40] ss:$8 sps:$4 sm:$0xff]  }
  0x9f   : > { %v1015_v11 = vld [vmem:[#allocation7 + $0x54] ss:$8 sps:$4 sm:$0xff]   ;;  %v1017_v12 = vld [vmem:[#allocation7 + $0x50] ss:$8 sps:$4 sm:$0xff]   ;;  %v1018_v13 = vld [vmem:[#allocation7 + $0x64] ss:$8 sps:$4 sm:$0xff]  }
  0xa0   : > { %v1020_v14 = vld [vmem:[#allocation7 + $0x60] ss:$8 sps:$4 sm:$0xff]   ;;  %v1021_v15 = vld [vmem:[#allocation7 + $0x74] ss:$8 sps:$4 sm:$0xff]   ;;  %v1023_v16 = vld [vmem:[#allocation7 + $0x70] ss:$8 sps:$4 sm:$0xff]  }
  0xa1   : > { %490 = vmatpush1.bf16.msra.mxu0 %v1005_v4  ;;  %v1024_v24 = vld [vmem:[#allocation8] sm:$0xff]   ;;  %v1245_v25 = vmov 0.0   ;;  %v1025_v33 = vld [vmem:[#allocation8 + $0x8] sm:$0xff]   ;;  %v1026_v34 = vld [vmem:[#allocation8 + $0x10] sm:$0xff]   ;;  %v549_v38 = vshrl.u32 %v548_v36, 7  ;;  %vm1246_vm0 = vmmov 0  }
  0xa2   : > { %491 = vmatprep.subr.bf16.mxu0 %v1006_v5  ;;  %901 = vmatprep.subr.bf16.mxu1 %v1245_v25  ;;  %v1027_v35 = vld [vmem:[#allocation8 + $0x18] sm:$0xff]   ;;  %v1028_v37 = vld [vmem:[#allocation8 + $0x20] sm:$0xff]   ;;  %v1029_v40 = vld [vmem:[#allocation8 + $0x28] sm:$0xff]   ;;  %s889_s18 = sshll.u32 %s1314_s9, 7  ;;  %s386_s10 = scalar_lea.vmem [#allocation10], %s1496_s5 }
  0xa3   : > { %902 = vmatpush3.bf16.msra.mxu1 %v1024_v24  ;;  %v554_v39 = vsub.s32 1, %v549_v38  ;;  %v528_v41 = vld [vmem:[%s1591_s3] sm:$0x3]  ;;  %v1030_v43 = vld [vmem:[#allocation8 + $0x30] sm:$0xff]   ;;  %917 = vmatprep.mubr.msk.bf16.mxu1 %vm1246_vm0, %v1245_v25  ;;  %v1031_v46 = vld [vmem:[#allocation8 + $0x38] sm:$0xff]   ;;  %v550_v50 = vsub.s32 0, %v549_v38  ;;  %s1544_s13 = scalar_lea.hbm %s1596_s8, %s889_s18 }
  0xa4   : > { %903 = vmatprep.subr.bf16.mxu1 %v1245_v25  ;;  %v529_v44 = vld [vmem:[%s1592_s4] sm:$0x3]  ;;  %s734_s17 = sshll.u32 %s386_s10, 4  ;;  %s721_s19 = scalar_lea.sflag [#allocation4], %s1493_s15  ;;  %s1546_s17 = int_to_ptr.vmem [resolvable:$true] %s734_s17 }
  0xa5   : > { %492 = vmatpush1.bf16.msra.mxu0 %v1008_v6  ;;  %v555_v42 = vrot.slane %v528_v41, %v554_v39  ;;  %v568_v45 = vrot.slane %v529_v44, %v554_v39  ;;  %v551_v51 = vrot.slane %v528_v41, %v550_v50  ;;  %v564_v55 = vrot.slane %v529_v44, %v550_v50  ;;  %v388_v58 = vld [vmem:[%s332_s21] sm:$0xff]  ;;  %s1156_s26 = scalar_lea.vmem %s1546_s17, 128  ;;  %p1624_p13 = scmp.ne.s32.totalorder %s1616_s24, 0 }
  0xa6   : > { %493 = vmatprep.subr.bf16.mxu0 %v1009_v7  ;;  %p1157_p2 = scmp.ne.s32.totalorder %s1546_s17, %s1156_s26  ;;  %s1247_s9 = smov [#allocation10]  }
  0xa7   : > { %904 = vmatpush3.bf16.msra.mxu1 %v1025_v33  ;;  %s1160_s5 = sshll.u32 %s1247_s9, 4  ;;  %s1161_s5 = int_to_ptr.vmem [resolvable:$false] %s1160_s5 }
  0xa8   : > { %905 = vmatprep.subr.bf16.mxu1 %v1245_v25  ;;  %p1158_p6 = pnand %p1157_p2, %p1624_p13  ;;  %s1162_s11 = scalar_lea.vmem %s1161_s5, 256 }
  0xa9   : > { %494 = vmatpush1.bf16.msra.mxu0 %v1011_v8  ;;  %p1163_p4 = scmp.lt.s32.totalorder %s1546_s17, %s1161_s5  ;;  %p1164_p7 = scmp.lt.s32.totalorder %s1162_s11, %s1156_s26 }
  0xaa   : > { %495 = vmatprep.subr.bf16.mxu0 %v1012_v9  ;;  %p1159_p10 = pneg %p1158_p6 }
  0xab   : > { %906 = vmatpush3.bf16.msra.mxu1 %v1026_v34  ;;  %p1165_p3 = por %p1164_p7, %p1163_p4 }
  0xac   : > { %907 = vmatprep.subr.bf16.mxu1 %v1245_v25 }
  0xad   : > { %496 = vmatpush1.bf16.msra.mxu0 %v1014_v10  ;;  %p1166_p5 = pnand %p1165_p3, %p1159_p10 }
  0xae   : > { %497 = vmatprep.subr.bf16.mxu0 %v1015_v11 }
  0xaf   : > { %908 = vmatpush3.bf16.msra.mxu1 %v1027_v35 }
  0xb0   : > { %909 = vmatprep.subr.bf16.mxu1 %v1245_v25 }
  0xb1   : > { %498 = vmatpush1.bf16.msra.mxu0 %v1017_v12  ;;  %v885_v12 = vld [vmem:[%s1594_s6] ss:$0 sm:$0xff] }
  0xb2   : > { %499 = vmatprep.subr.bf16.mxu0 %v1018_v13 }
  0xb3   : > { %910 = vmatpush3.bf16.msra.mxu1 %v1028_v37 }
  0xb4   : > { %911 = vmatprep.subr.bf16.mxu1 %v1245_v25 }
  0xb5   : > { %500 = vmatpush1.bf16.msra.mxu0 %v1020_v14  ;;  %v886_v14 = vld [vmem:[%s1595_s7] ss:$0 sm:$0xff] }
  0xb6   : > { %501 = vmatprep.subr.bf16.mxu0 %v1021_v15 }
  0xb7   : > { %912 = vmatpush3.bf16.msra.mxu1 %v1029_v40 }
  0xb8   : > { %913 = vmatprep.subr.bf16.mxu1 %v1245_v25 }
  0xb9   : > { %502 = vmatpush1.bf16.msra.mxu0 %v1023_v16 }
  0xbb   : > { %914 = vmatpush3.bf16.msra.mxu1 %v1030_v43 }
  0xbc   : > { %520 = vmatmul.mubr.bf16.vlgmr.msra.gmra.mrb[0].mxu0 %v390_v18  ;;  %915 = vmatprep.subr.bf16.mxu1 %v1245_v25 }
  0xbf   : > { %916 = vmatpush3.bf16.msra.mxu1 %v1031_v46 }
 0x18f   : > { %v521_v19 = vpop.f32.mrb[0].mxu0 }
 0x190   : > { %v523_v20 = vpop.f32.mrb[1].mxu0 }
 0x191   : > { %v525_v21 = vpop.f32.mrb[2].mxu0  ;;  %v530_v22 = vadd.f32 %v523_v20, %v521_v19 }
 0x192   : > { %v526_v23 = vpop.f32.mrb[3].mxu0 }
 0x193   : > { %531 = vadd.xlane.f32.xlu0 %v530_v22 }
 0x220   : > { %v532_v26 = vpop.xlane.xlu0 %531 }
 0x221   : > { %v534_v27 = vmul.f32 0.00390625, %v532_v26 }
 0x223   : > { %v535_v28 = vsub.f32 %v521_v19, %v534_v27  ;;  %v536_v29 = vsub.f32 %v523_v20, %v534_v27 }
 0x225   : > { %v537_v30 = vmul.f32 %v535_v28, %v535_v28  ;;  %v538_v31 = vmul.f32 %v536_v29, %v536_v29 }
 0x227   : > { %v539_v32 = vadd.f32 %v538_v31, %v537_v30 }
 0x229   : > { %540 = vadd.xlane.f32.xlu0 %v539_v32 }
 0x2b6   : > { %v541_v47 = vpop.xlane.xlu0 %540 }
 0x2b7   : > { %v542_v48 = vmul.f32 0.00390625, %v541_v47 }
 0x2b9   : > { %v543_v49 = vadd.f32 1e-05, %v542_v48 }
 0x2bb   : > { %1032 = vrsqrt.f32 %v543_v49 }
 0x2c5   : > { %v1033_v52 = vpop.eup %1032 }
 0x2c6   : > { %v545_v53 = vmul.f32 %v1033_v52, %v535_v28  ;;  %v546_v54 = vmul.f32 %v1033_v52, %v536_v29 }
 0x2c8   : > { %v558_v56 = vmul.f32 %v551_v51, %v545_v53  ;;  %v559_v57 = vmul.f32 %v555_v42, %v546_v54 }
 0x2ca   : > { %v571_v59 = vadd.f32 %v564_v55, %v558_v56  ;;  %v572_v60 = vadd.f32 %v568_v45, %v559_v57 }
 0x2cc   : > { %v573_v61 = vadd.f32 %v571_v59, %v388_v58 }
 0x2ce   : > { %v574_v62 = vmax.f32 %v573_v61, 0.0 }
 0x2d0   : > { %v575_v63 = vpack.c.bf16 %v574_v62, %v574_v62 }
 0x2d2   : > { %918 = vmatmul.mubr.bf16.vlgmr.msra.gmra.mrb[0].mxu1 %v575_v63 }
 0x3a5   : > { %v674_v0 = vpop.f32.mrb[0].mxu1 }
 0x3a6   : > { %682 = vadd.xlane.f32.xlu1 %v674_v0  ;;  %v919_v1 = vpop.f32.mrb[1].mxu1 }
 0x3a7   : > { %v677_v2 = vpop.f32.mrb[2].mxu1 }
 0x3a8   : > { %v920_v3 = vpop.f32.mrb[3].mxu1 }
 0x433   : > { %v683_v4 = vpop.xlane.xlu1 %682 }
 0x434   : > { %v685_v5 = vmul.f32 0.0078125, %v683_v4 }
 0x436   : > { %v686_v6 = vsub.f32 %v674_v0, %v685_v5 }
 0x438   : > { %v687_v7 = vmul.f32 %v686_v6, %v686_v6 }
 0x43a   : > { %688 = vadd.xlane.f32.xlu1 %v687_v7 }
 0x4c7   : > { %v689_v8 = vpop.xlane.xlu1 %688 }
 0x4c8   : > { %v690_v9 = vmul.f32 0.0078125, %v689_v8 }
 0x4ca   : > { %v691_v10 = vadd.f32 1e-05, %v690_v9 }
 0x4cc   : > { %1034 = vrsqrt.f32 %v691_v10 }
 0x4d6   : > { %v1035_v11 = vpop.eup %1034 }
 0x4d7   : > { %v693_v13 = vmul.f32 %v1035_v11, %v686_v6 }
 0x4d9   : > { %v700_v15 = vmul.f32 %v885_v12, %v693_v13 }
 0x4db   : > { %v707_v16 = vadd.f32 %v886_v14, %v700_v15 }
 0x4dd   : > { %v708_v18 = vadd.f32 %v707_v16, %v572_v60 }
 0x4df   : > { %v887_v19 = vmul.f32 -1.442695, %v708_v18 }
 0x4e1   : > { %1036 = vpow2.f32 %v887_v19 }
 0x4eb   : > { %v1037_v20 = vpop.eup %1036 }
 0x4ec   : > { %v712_v21 = vadd.f32 1.0, %v1037_v20 }
 0x4ee   : > { %1038 = vrcp.f32 %v712_v21 }
 0x4f8   : > { %v1039_v22 = vpop.eup %1038 }
 0x4f9   : > { %v715_v23 = vsub.f32 1.0, %v1039_v22  ;;  %v717_v25 = vmul.f32 %v1039_v22, %v574_v62 }
 0x4fb   : > { %v716_v24 = vmul.f32 %v715_v23, %v1520_v17 }
 0x4fd   : > { %v718_v26 = vadd.f32 %v717_v25, %v716_v24 }
 0x4ff   : > { %719 = vst [vmem:[%s386_s10] sm:$0xff] %v718_v26 }
 0x500   : > { %1169 = shalt.err (!%p1166_p5)
}
 0x501   : > { %s1170_s15 = scalar_lea.hbm %s1544_s13, 128  ;;  %s1174_s16 = scalar_lea.hbm %s1596_s8, 256 }
 0x502   : > { %p1171_p1 = scmp.ne.s32.totalorder %s1544_s13, %s1170_s15  ;;  %p1175_p0 = scmp.lt.u32.totalorder %s1544_s13, %s1596_s8 }
 0x503   : > { %p1176_p9 = scmp.lt.u32.totalorder %s1174_s16, %s1170_s15  ;;  %p1178_p2 = scmp.lt.u32.totalorder %s1170_s15, %s1544_s13 }
 0x504   : > { %p1172_p8 = pnand %p1171_p1, %p1624_p13 }
 0x505   : > { %p1177_p12 = por %p1176_p9, %p1175_p0 }
 0x506   : > { %p1173_p11 = pneg %p1172_p8 }
 0x507   : > { %p1179_p6 = por %p1178_p2, %p1177_p12 }
 0x509   : > { %p1180_p10 = pnand %p1179_p6, %p1173_p11 }
 0x50b   : > { %1183 = shalt.err (!%p1180_p10)
}
 0x50c   : > { %933 = dma.vmem_to_hbm [thread:$0]  (%p1624_p13), %s1546_s17, 128, %s1544_s13, %s721_s19  }
 0x50d PF: > { %s746_s20 = sand.u32 1, %s1222_s27   ;;  %p1625_p4 = scmp.ne.s32.totalorder %s1608_s12, 0 }
 0x50e   : > { %p1626_p7 = scmp.ge.s32.totalorder %s1234_s30, 2  ;;  %s747_s2 = scalar_lea.sflag [#allocation4], %s746_s20 }
 0x510   : > { %p950_p3 = pnand %p1626_p7, %p1625_p4 }
 0x512   : > { %1217 = dma.done.wait (!%p950_p3), %s747_s2, 128  }
 0x513   : > { %1219 = vsyncadd (!%p950_p3), %s747_s2, 4294967168  ;;  %s1627_s30 = sld [smem:[#allocation17_spill]]  ;;  %s1628_s18 = sld [smem:[#allocation16_spill]] }
 0x514   : > { %s1629_s29 = sld [smem:[#allocation18_spill]]  ;;  %s1630_s27 = smov %s1226_s28 }
 0x519   : > { %p25_p5 = scmp.ge.s32.totalorder %s1627_s30, 4   ;;  %s1631_s28 = smov %s1628_s18 }
 0x51b   :  { %27 = sbr.rel (!%p25_p5) target bundleno = 11 (0xb), region = 118 }
 0x522   :  { %752 = vsyncpa [#allocation3], 1 }
 0x523   :  { %754 = vsyncpa [#allocation3 + $0x1], 1 }
 0x524   :  { %755 = vsyncpa [#allocation6], 1 }
 0x525   :  { %757 = vsyncpa [#allocation6 + $0x1], 1 }
 0x526   :  { %758 = vsyncpa [#allocation9], 1 }
 0x527   :  { %759 = vsyncpa [#allocation4], 1 }
 0x528   :  { %761 = vsyncpa [#allocation4 + $0x1], 1 }

</bundles_post_ra>
